<compile_context>
chip_gen: v7x
topology: tpu7x:2x2x1
jax: 0.10.0
libtpu: 0.0.40
codegen_flags: <defaults>
</compile_context>

<pallas_src>
import functools

import jax
import jax.numpy as jnp
from jax import lax
from jax.experimental import pallas as pl
from jax.experimental.pallas import tpu as pltpu

_EPS = 0.001
_SENTINEL = 1e18   # pre-mask value for invalid targets; squares to 1e36 (finite f32)
_MIN_INIT = 1e37   # init value for running-min accumulators (> sentinel^2)
_LANES = 128
_CHUNK = 8         # sublanes processed per inner step (= one f32 vreg of data)
_BIG = 1e30        # reference-only sentinel (post-square), as in the original


def _cdiv(a, b):
    return -(-a // b)


def _round_up(x, m):
    return ((x + m - 1) // m) * m


def _chamfer_kernel(centers_ref, tgt_ref, acc_ref, *, n_centers, tile_s,
                    read_rows, unroll):
    """One (batch b, split s, M-tile j) grid step.

    centers_ref : SMEM (N, P) f32                   -- bin centers (whole array)
    tgt_ref     : VMEM (1, 1, tile_s, 128)          -- one lane-dense target tile
    acc_ref     : VMEM (1, 1, 8*P + 16, 128) f32    -- resident accumulator block:
                    rows [8p, 8p+8)     : running per-center min (full sublane res.)
                    rows [8P, 8P+8)     : per-(sublane,lane) partial sum of min-over-centers
                    rows [8P+8, 8P+16)  : per-(sublane,lane) valid-point count
    """
    b = pl.program_id(0)
    j = pl.program_id(2)
    row_sum = 8 * n_centers

    @pl.when(j == 0)
    def _init():
        acc_ref[0, 0, 0:row_sum, :] = jnp.full((row_sum, _LANES), _MIN_INIT,
                                               jnp.float32)
        acc_ref[0, 0, row_sum:row_sum + 2 * _CHUNK, :] = jnp.zeros(
            (2 * _CHUNK, _LANES), jnp.float32)

    # Hoist the P center splats out of the chunk loop (JAX does not CSE
    # broadcast_in_dim; re-splatting per chunk would add P VALU ops per chunk).
    c_vecs = [
        jnp.full((_CHUNK, _LANES), centers_ref[b, p], dtype=jnp.float32)
        for p in range(n_centers)
    ]

    num_chunks = tile_s // read_rows
    sub_blocks = read_rows // _CHUNK   # 1 for f32, 2 for bf16/f16 (packing-aligned reads)

    def chunk_body(i, carry):
        ysum, ycnt, minx = carry
        off = pl.multiple_of(i * read_rows, read_rows)
        raw = tgt_ref[0, 0, pl.ds(off, read_rows), :].astype(jnp.float32)
        for h in range(sub_blocks):
            x = raw[h * _CHUNK:(h + 1) * _CHUNK]          # (8, 128) f32
            valid = x >= _EPS
            # Pre-mask invalid / padded points once: their squared distance
            # (~1e36) can never beat a real point, so no per-center select.
            t = jnp.where(valid, x, _SENTINEL)
            miny = None
            new_minx = []
            for p in range(n_centers):                     # P is small: unrolled
                d = t - c_vecs[p]
                d = d * d                                  # (8, 128)
                new_minx.append(jnp.minimum(minx[p], d))
                miny = d if miny is None else jnp.minimum(miny, d)
            minx = tuple(new_minx)
            ysum = ysum + jnp.where(valid, miny, 0.0)
            ycnt = ycnt + valid.astype(jnp.float32)
        return ysum, ycnt, minx

    zeros = jnp.zeros((_CHUNK, _LANES), jnp.float32)
    minx0 = tuple(jnp.full((_CHUNK, _LANES), _MIN_INIT, jnp.float32)
                  for _ in range(n_centers))
    ysum, ycnt, minx = lax.fori_loop(0, num_chunks, chunk_body,
                                     (zeros, zeros, minx0), unroll=unroll)

    # Single batched, sublane-aligned RMW of the resident accumulator per tile
    # (full-vreg loads + unmasked stores, no per-center 1-sublane writes).
    stacked = jnp.concatenate(list(minx), axis=0)                     # (8*P, 128)
    acc_ref[0, 0, 0:row_sum, :] = jnp.minimum(acc_ref[0, 0, 0:row_sum, :], stacked)
    acc_ref[0, 0, row_sum:row_sum + 2 * _CHUNK, :] = (
        acc_ref[0, 0, row_sum:row_sum + 2 * _CHUNK, :]
        + jnp.concatenate([ysum, ycnt], axis=0))


def bins_chamfer_loss(bins, target_depth_maps, *, max_tile_m=262144, unroll=4):
    """bins: (N, NB) float; target_depth_maps: (N, C, H, W) float. Returns scalar f32."""
    bins = bins.astype(jnp.float32)
    n, nb = bins.shape
    p = nb - 1
    centers = 0.5 * (bins[:, 1:] + bins[:, :-1])                     # (n, p) -> SMEM

    tgt = target_depth_maps.reshape(n, -1)                           # torch .flatten(1)
    if tgt.dtype in (jnp.dtype(jnp.bfloat16), jnp.dtype(jnp.float16)):
        read_rows = 2 * _CHUNK        # keep native 16-bit dtype; reads stay packing-aligned
    else:
        if tgt.dtype != jnp.dtype(jnp.float32):
            tgt = tgt.astype(jnp.float32)
        read_rows = _CHUNK
    m = tgt.shape[1]

    lane_block = read_rows * _LANES
    max_tile_m = max(lane_block, _round_up(max_tile_m, lane_block))
    m_aligned = _round_up(m, lane_block)

    # Guarantee a >=2-way parallel grid even for single-image calls (v7x: 2 TCs).
    num_splits = 2 if (n == 1 and m_aligned > lane_block) else 1

    num_tiles = _round_up(_cdiv(m_aligned, max_tile_m), num_splits)
    tile_m = _round_up(_cdiv(m_aligned, num_tiles), lane_block)
    m_pad = num_tiles * tile_m
    tile_s = tile_m // _LANES
    tiles_per_split = num_tiles // num_splits

    if m_pad != m:
        # zero padding (< 0.001) is treated as invalid and cannot affect the
        # loss; padding is minimal (a fraction of one lane block per tile).
        tgt = jnp.pad(tgt, ((0, 0), (0, m_pad - m)))
    tgt4 = tgt.reshape(n, num_tiles, tile_s, _LANES)

    rows = 8 * p + 2 * _CHUNK          # min region + ysum region + ycnt region

    kernel = functools.partial(
        _chamfer_kernel, n_centers=p, tile_s=tile_s, read_rows=read_rows,
        unroll=max(1, min(unroll, tile_s // read_rows)))

    def tgt_index(b, s, j):
        return (b, s * tiles_per_split + j, 0, 0)

    def acc_index(b, s, j):
        return (b, s, 0, 0)

    acc = pl.pallas_call(
        kernel,
        out_shape=jax.ShapeDtypeStruct((n, num_splits, rows, _LANES), jnp.float32),
        grid=(n, num_splits, tiles_per_split),
        in_specs=[
            pl.BlockSpec(memory_space=pltpu.MemorySpace.SMEM),        # centers (whole)
            pl.BlockSpec((1, 1, tile_s, _LANES), tgt_index),          # one target tile
        ],
        out_specs=pl.BlockSpec((1, 1, rows, _LANES), acc_index),      # resident acc
        compiler_params=pltpu.CompilerParams(
            dimension_semantics=("parallel", "parallel", "arbitrary")),
    )(centers, tgt4)

    # Tiny epilogue in plain JAX: final reductions, divides, batch means.
    row_sum = 8 * p
    minx = acc[:, :, :row_sum, :].reshape(n, num_splits, p, _CHUNK, _LANES)
    # NOTE: a batch row with zero valid target points yields sentinel-scale
    # garbage in cham_x, mirroring the degenerate behavior of the reference.
    cham_x_b = jnp.sum(jnp.min(minx, axis=(1, 3, 4)), axis=-1) / jnp.float32(p)
    ysum = jnp.sum(acc[:, :, row_sum:row_sum + _CHUNK, :], axis=(1, 2, 3))
    ycnt = jnp.sum(acc[:, :, row_sum + _CHUNK:, :], axis=(1, 2, 3))
    cham_y_b = ysum / jnp.maximum(ycnt, 1.0)
    return jnp.mean(cham_x_b) + jnp.mean(cham_y_b)


def _reference(bins, target_depth_maps):
    """Pure-JAX mirror of the pytorch3d-based forward (for validation only)."""
    bins = bins.astype(jnp.float32)
    n, nb = bins.shape
    p = nb - 1
    centers = 0.5 * (bins[:, 1:] + bins[:, :-1])
    tgt = target_depth_maps.astype(jnp.float32).reshape(n, -1)
    mask = tgt >= _EPS
    d = (centers[:, :, None] - tgt[:, None, :]) ** 2
    cham_x = jnp.min(jnp.where(mask[:, None, :], d, _BIG), axis=2)
    cham_x_b = cham_x.sum(1) / p
    cham_y = jnp.min(d, axis=1)
    cham_y_b = jnp.where(mask, cham_y, 0.0).sum(1) / jnp.maximum(mask.sum(1), 1)
    return jnp.mean(cham_x_b) + jnp.mean(cham_y_b)


if __name__ == "__main__":
    key = jax.random.PRNGKey(0)

    def make_case(k, n, nb, c, h, w, dtype=jnp.float32):
        k_bins, k_tgt, k_hole = jax.random.split(k, 3)
        # sorted positive bin edges; depth maps with some invalid (<0.001) pixels
        b = jnp.sort(jax.random.uniform(k_bins, (n, nb), minval=0.1, maxval=10.0), axis=1)
        d = jax.random.uniform(k_tgt, (n, c, h, w), minval=0.05, maxval=10.0)
        holes = jax.random.uniform(k_hole, (n, c, h, w)) < 0.2
        d = jnp.where(holes, 0.0, d).astype(dtype)
        return b, d

    keys = jax.random.split(key, 4)
    cases = [
        (make_case(keys[0], 2, 17, 1, 16, 16), {}),                       # baseline small case
        (make_case(keys[1], 1, 17, 1, 64, 64), {}),                       # N=1 -> 2-way M split (v7x)
        (make_case(keys[2], 2, 17, 1, 48, 48), dict(max_tile_m=1024)),    # multi-tile streaming + padding
        (make_case(keys[3], 1, 17, 1, 64, 64, jnp.bfloat16), {}),         # native bf16 DMA, f32 accumulation
    ]

    for (bins, depth), kwargs in cases:
        loss = jax.block_until_ready(bins_chamfer_loss(bins, depth, **kwargs))
        ref = jax.block_until_ready(_reference(bins, depth))
        assert jnp.isfinite(loss), "loss is not finite"
        assert jnp.allclose(loss, ref, rtol=1e-4, atol=1e-5), (loss, ref)

    print("KERNEL_OK")
</pallas_src>

<mosaic_0001>
module attributes {stable_mosaic.version = 11 : i64} {
  func.func @_chamfer_kernel(%arg0: i32, %arg1: i32, %arg2: i32, %arg3: memref<2x16xf32, #tpu.memory_space<smem>>, %arg4: memref<1x1x8x128xf32, #tpu.memory_space<vmem>>, %arg5: memref<1x1x144x128xf32, #tpu.memory_space<vmem>>) attributes {dimension_semantics = [#tpu.dimension_semantics<parallel>, #tpu.dimension_semantics<parallel>, #tpu.dimension_semantics<arbitrary>], iteration_bounds = array<i64: 2, 1, 1>, scalar_prefetch = 0 : i64, scratch_operands = 0 : i64, tpu.core_type = #tpu.core_type<tc>, window_params = [{transform_indices = @transform_0, window_bounds = array<i64: 2, 16>}, {transform_indices = @transform_1, window_bounds = array<i64: 1, 1, 8, 128>}, {transform_indices = @transform_2, window_bounds = array<i64: 1, 1, 144, 128>}]} {
    %c0_i32 = arith.constant 0 : i32
    %0 = arith.cmpi eq, %arg2, %c0_i32 : i32
    %1 = arith.extui %0 : i1 to i32
    %c0_i32_0 = arith.constant 0 : i32
    %2 = arith.cmpi ne, %1, %c0_i32_0 : i32
    scf.if %2 {
      %cst_39 = arith.constant 9.99999993E+36 : f32
      %160 = vector.broadcast %cst_39 : f32 to vector<128x128xf32>
      %c0_40 = arith.constant 0 : index
      %c0_41 = arith.constant 0 : index
      %c0_42 = arith.constant 0 : index
      %c0_43 = arith.constant 0 : index
      %161 = vector.load %arg5[%c0_40, %c0_41, %c0_42, %c0_43] : memref<1x1x144x128xf32, #tpu.memory_space<vmem>>, vector<1x1x128x128xf32>
      %162 = vector.shape_cast %161 : vector<1x1x128x128xf32> to vector<128x128xf32>
      %163 = vector.shape_cast %160 : vector<128x128xf32> to vector<1x1x128x128xf32>
      tpu.vector_store %arg5[%c0_40, %c0_41, %c0_42, %c0_43], %163 {strides = array<i32>} : memref<1x1x144x128xf32, #tpu.memory_space<vmem>>, vector<1x1x128x128xf32>,
      %cst_44 = arith.constant 0.000000e+00 : f32
      %164 = vector.broadcast %cst_44 : f32 to vector<16x128xf32>
      %c0_45 = arith.constant 0 : index
      %c0_46 = arith.constant 0 : index
      %c128_47 = arith.constant 128 : index
      %c0_48 = arith.constant 0 : index
      %165 = vector.load %arg5[%c0_45, %c0_46, %c128_47, %c0_48] : memref<1x1x144x128xf32, #tpu.memory_space<vmem>>, vector<1x1x16x128xf32>
      %166 = vector.shape_cast %165 : vector<1x1x16x128xf32> to vector<16x128xf32>
      %167 = vector.shape_cast %164 : vector<16x128xf32> to vector<1x1x16x128xf32>
      tpu.vector_store %arg5[%c0_45, %c0_46, %c128_47, %c0_48], %167 {strides = array<i32>} : memref<1x1x144x128xf32, #tpu.memory_space<vmem>>, vector<1x1x16x128xf32>,
    } else {
    }
    %3 = arith.index_cast %arg0 : i32 to index
    %c0 = arith.constant 0 : index
    %4 = memref.load %arg3[%3, %c0] : memref<2x16xf32, #tpu.memory_space<smem>>
    %5 = vector.broadcast %4 : f32 to vector<8x128xf32>
    %6 = arith.index_cast %arg0 : i32 to index
    %c1 = arith.constant 1 : index
    %7 = memref.load %arg3[%6, %c1] : memref<2x16xf32, #tpu.memory_space<smem>>
    %8 = vector.broadcast %7 : f32 to vector<8x128xf32>
    %9 = arith.index_cast %arg0 : i32 to index
    %c2 = arith.constant 2 : index
    %10 = memref.load %arg3[%9, %c2] : memref<2x16xf32, #tpu.memory_space<smem>>
    %11 = vector.broadcast %10 : f32 to vector<8x128xf32>
    %12 = arith.index_cast %arg0 : i32 to index
    %c3 = arith.constant 3 : index
    %13 = memref.load %arg3[%12, %c3] : memref<2x16xf32, #tpu.memory_space<smem>>
    %14 = vector.broadcast %13 : f32 to vector<8x128xf32>
    %15 = arith.index_cast %arg0 : i32 to index
    %c4 = arith.constant 4 : index
    %16 = memref.load %arg3[%15, %c4] : memref<2x16xf32, #tpu.memory_space<smem>>
    %17 = vector.broadcast %16 : f32 to vector<8x128xf32>
    %18 = arith.index_cast %arg0 : i32 to index
    %c5 = arith.constant 5 : index
    %19 = memref.load %arg3[%18, %c5] : memref<2x16xf32, #tpu.memory_space<smem>>
    %20 = vector.broadcast %19 : f32 to vector<8x128xf32>
    %21 = arith.index_cast %arg0 : i32 to index
    %c6 = arith.constant 6 : index
    %22 = memref.load %arg3[%21, %c6] : memref<2x16xf32, #tpu.memory_space<smem>>
    %23 = vector.broadcast %22 : f32 to vector<8x128xf32>
    %24 = arith.index_cast %arg0 : i32 to index
    %c7 = arith.constant 7 : index
    %25 = memref.load %arg3[%24, %c7] : memref<2x16xf32, #tpu.memory_space<smem>>
    %26 = vector.broadcast %25 : f32 to vector<8x128xf32>
    %27 = arith.index_cast %arg0 : i32 to index
    %c8 = arith.constant 8 : index
    %28 = memref.load %arg3[%27, %c8] : memref<2x16xf32, #tpu.memory_space<smem>>
    %29 = vector.broadcast %28 : f32 to vector<8x128xf32>
    %30 = arith.index_cast %arg0 : i32 to index
    %c9 = arith.constant 9 : index
    %31 = memref.load %arg3[%30, %c9] : memref<2x16xf32, #tpu.memory_space<smem>>
    %32 = vector.broadcast %31 : f32 to vector<8x128xf32>
    %33 = arith.index_cast %arg0 : i32 to index
    %c10 = arith.constant 10 : index
    %34 = memref.load %arg3[%33, %c10] : memref<2x16xf32, #tpu.memory_space<smem>>
    %35 = vector.broadcast %34 : f32 to vector<8x128xf32>
    %36 = arith.index_cast %arg0 : i32 to index
    %c11 = arith.constant 11 : index
    %37 = memref.load %arg3[%36, %c11] : memref<2x16xf32, #tpu.memory_space<smem>>
    %38 = vector.broadcast %37 : f32 to vector<8x128xf32>
    %39 = arith.index_cast %arg0 : i32 to index
    %c12 = arith.constant 12 : index
    %40 = memref.load %arg3[%39, %c12] : memref<2x16xf32, #tpu.memory_space<smem>>
    %41 = vector.broadcast %40 : f32 to vector<8x128xf32>
    %42 = arith.index_cast %arg0 : i32 to index
    %c13 = arith.constant 13 : index
    %43 = memref.load %arg3[%42, %c13] : memref<2x16xf32, #tpu.memory_space<smem>>
    %44 = vector.broadcast %43 : f32 to vector<8x128xf32>
    %45 = arith.index_cast %arg0 : i32 to index
    %c14 = arith.constant 14 : index
    %46 = memref.load %arg3[%45, %c14] : memref<2x16xf32, #tpu.memory_space<smem>>
    %47 = vector.broadcast %46 : f32 to vector<8x128xf32>
    %48 = arith.index_cast %arg0 : i32 to index
    %c15 = arith.constant 15 : index
    %49 = memref.load %arg3[%48, %c15] : memref<2x16xf32, #tpu.memory_space<smem>>
    %50 = vector.broadcast %49 : f32 to vector<8x128xf32>
    %cst = arith.constant 0.000000e+00 : f32
    %51 = vector.broadcast %cst : f32 to vector<8x128xf32>
    %cst_1 = arith.constant 9.99999993E+36 : f32
    %52 = vector.broadcast %cst_1 : f32 to vector<8x128xf32>
    %cst_2 = arith.constant 9.99999993E+36 : f32
    %53 = vector.broadcast %cst_2 : f32 to vector<8x128xf32>
    %cst_3 = arith.constant 9.99999993E+36 : f32
    %54 = vector.broadcast %cst_3 : f32 to vector<8x128xf32>
    %cst_4 = arith.constant 9.99999993E+36 : f32
    %55 = vector.broadcast %cst_4 : f32 to vector<8x128xf32>
    %cst_5 = arith.constant 9.99999993E+36 : f32
    %56 = vector.broadcast %cst_5 : f32 to vector<8x128xf32>
    %cst_6 = arith.constant 9.99999993E+36 : f32
    %57 = vector.broadcast %cst_6 : f32 to vector<8x128xf32>
    %cst_7 = arith.constant 9.99999993E+36 : f32
    %58 = vector.broadcast %cst_7 : f32 to vector<8x128xf32>
    %cst_8 = arith.constant 9.99999993E+36 : f32
    %59 = vector.broadcast %cst_8 : f32 to vector<8x128xf32>
    %cst_9 = arith.constant 9.99999993E+36 : f32
    %60 = vector.broadcast %cst_9 : f32 to vector<8x128xf32>
    %cst_10 = arith.constant 9.99999993E+36 : f32
    %61 = vector.broadcast %cst_10 : f32 to vector<8x128xf32>
    %cst_11 = arith.constant 9.99999993E+36 : f32
    %62 = vector.broadcast %cst_11 : f32 to vector<8x128xf32>
    %cst_12 = arith.constant 9.99999993E+36 : f32
    %63 = vector.broadcast %cst_12 : f32 to vector<8x128xf32>
    %cst_13 = arith.constant 9.99999993E+36 : f32
    %64 = vector.broadcast %cst_13 : f32 to vector<8x128xf32>
    %cst_14 = arith.constant 9.99999993E+36 : f32
    %65 = vector.broadcast %cst_14 : f32 to vector<8x128xf32>
    %cst_15 = arith.constant 9.99999993E+36 : f32
    %66 = vector.broadcast %cst_15 : f32 to vector<8x128xf32>
    %cst_16 = arith.constant 9.99999993E+36 : f32
    %67 = vector.broadcast %cst_16 : f32 to vector<8x128xf32>
    %c0_i32_17 = arith.constant 0 : i32
    %c8_i32 = arith.constant 8 : i32
    %68 = arith.muli %c0_i32_17, %c8_i32 : i32
    %69 = tpu.assume_multiple %68, 8 : i32
    %c0_18 = arith.constant 0 : index
    %c0_19 = arith.constant 0 : index
    %70 = arith.index_cast %69 : i32 to index
    %c0_20 = arith.constant 0 : index
    %71 = vector.load %arg4[%c0_18, %c0_19, %70, %c0_20] : memref<1x1x8x128xf32, #tpu.memory_space<vmem>>, vector<1x1x8x128xf32>
    %72 = vector.shape_cast %71 : vector<1x1x8x128xf32> to vector<8x128xf32>
    %cst_21 = arith.constant 1.000000e-03 : f32
    %73 = vector.broadcast %cst_21 : f32 to vector<8x128xf32>
    %74 = arith.cmpf oge, %72, %73 : vector<8x128xf32>
    %cst_22 = arith.constant 9.99999984E+17 : f32
    %75 = vector.broadcast %cst_22 : f32 to vector<8x128xf32>
    %76 = arith.select %74, %72, %75 : vector<8x128xi1>, vector<8x128xf32>
    %77 = arith.subf %76, %5 : vector<8x128xf32>
    %78 = arith.mulf %77, %77 : vector<8x128xf32>
    %79 = arith.minimumf %52, %78 : vector<8x128xf32>
    %80 = arith.subf %76, %8 : vector<8x128xf32>
    %81 = arith.mulf %80, %80 : vector<8x128xf32>
    %82 = arith.minimumf %53, %81 : vector<8x128xf32>
    %83 = arith.minimumf %78, %81 : vector<8x128xf32>
    %84 = arith.subf %76, %11 : vector<8x128xf32>
    %85 = arith.mulf %84, %84 : vector<8x128xf32>
    %86 = arith.minimumf %54, %85 : vector<8x128xf32>
    %87 = arith.minimumf %83, %85 : vector<8x128xf32>
    %88 = arith.subf %76, %14 : vector<8x128xf32>
    %89 = arith.mulf %88, %88 : vector<8x128xf32>
    %90 = arith.minimumf %55, %89 : vector<8x128xf32>
    %91 = arith.minimumf %87, %89 : vector<8x128xf32>
    %92 = arith.subf %76, %17 : vector<8x128xf32>
    %93 = arith.mulf %92, %92 : vector<8x128xf32>
    %94 = arith.minimumf %56, %93 : vector<8x128xf32>
    %95 = arith.minimumf %91, %93 : vector<8x128xf32>
    %96 = arith.subf %76, %20 : vector<8x128xf32>
    %97 = arith.mulf %96, %96 : vector<8x128xf32>
    %98 = arith.minimumf %57, %97 : vector<8x128xf32>
    %99 = arith.minimumf %95, %97 : vector<8x128xf32>
    %100 = arith.subf %76, %23 : vector<8x128xf32>
    %101 = arith.mulf %100, %100 : vector<8x128xf32>
    %102 = arith.minimumf %58, %101 : vector<8x128xf32>
    %103 = arith.minimumf %99, %101 : vector<8x128xf32>
    %104 = arith.subf %76, %26 : vector<8x128xf32>
    %105 = arith.mulf %104, %104 : vector<8x128xf32>
    %106 = arith.minimumf %59, %105 : vector<8x128xf32>
    %107 = arith.minimumf %103, %105 : vector<8x128xf32>
    %108 = arith.subf %76, %29 : vector<8x128xf32>
    %109 = arith.mulf %108, %108 : vector<8x128xf32>
    %110 = arith.minimumf %60, %109 : vector<8x128xf32>
    %111 = arith.minimumf %107, %109 : vector<8x128xf32>
    %112 = arith.subf %76, %32 : vector<8x128xf32>
    %113 = arith.mulf %112, %112 : vector<8x128xf32>
    %114 = arith.minimumf %61, %113 : vector<8x128xf32>
    %115 = arith.minimumf %111, %113 : vector<8x128xf32>
    %116 = arith.subf %76, %35 : vector<8x128xf32>
    %117 = arith.mulf %116, %116 : vector<8x128xf32>
    %118 = arith.minimumf %62, %117 : vector<8x128xf32>
    %119 = arith.minimumf %115, %117 : vector<8x128xf32>
    %120 = arith.subf %76, %38 : vector<8x128xf32>
    %121 = arith.mulf %120, %120 : vector<8x128xf32>
    %122 = arith.minimumf %63, %121 : vector<8x128xf32>
    %123 = arith.minimumf %119, %121 : vector<8x128xf32>
    %124 = arith.subf %76, %41 : vector<8x128xf32>
    %125 = arith.mulf %124, %124 : vector<8x128xf32>
    %126 = arith.minimumf %64, %125 : vector<8x128xf32>
    %127 = arith.minimumf %123, %125 : vector<8x128xf32>
    %128 = arith.subf %76, %44 : vector<8x128xf32>
    %129 = arith.mulf %128, %128 : vector<8x128xf32>
    %130 = arith.minimumf %65, %129 : vector<8x128xf32>
    %131 = arith.minimumf %127, %129 : vector<8x128xf32>
    %132 = arith.subf %76, %47 : vector<8x128xf32>
    %133 = arith.mulf %132, %132 : vector<8x128xf32>
    %134 = arith.minimumf %66, %133 : vector<8x128xf32>
    %135 = arith.minimumf %131, %133 : vector<8x128xf32>
    %136 = arith.subf %76, %50 : vector<8x128xf32>
    %137 = arith.mulf %136, %136 : vector<8x128xf32>
    %138 = arith.minimumf %67, %137 : vector<8x128xf32>
    %139 = arith.minimumf %135, %137 : vector<8x128xf32>
    %cst_23 = arith.constant 0.000000e+00 : f32
    %140 = vector.broadcast %cst_23 : f32 to vector<8x128xf32>
    %141 = arith.select %74, %139, %140 : vector<8x128xi1>, vector<8x128xf32>
    %142 = arith.addf %51, %141 : vector<8x128xf32>
    %143 = arith.extui %74 : vector<8x128xi1> to vector<8x128xi32>
    %144 = arith.sitofp %143 : vector<8x128xi32> to vector<8x128xf32>
    %145 = arith.addf %51, %144 : vector<8x128xf32>
    %c1_i32 = arith.constant 1 : i32
    %146 = tpu.concatenate %79, %82, %86, %90, %94, %98, %102, %106, %110, %114, %118, %122, %126, %130, %134, %138 in 0 : vector<8x128xf32>, vector<8x128xf32>, vector<8x128xf32>, vector<8x128xf32>, vector<8x128xf32>, vector<8x128xf32>, vector<8x128xf32>, vector<8x128xf32>, vector<8x128xf32>, vector<8x128xf32>, vector<8x128xf32>, vector<8x128xf32>, vector<8x128xf32>, vector<8x128xf32>, vector<8x128xf32>, vector<8x128xf32> -> vector<128x128xf32>
    %c0_24 = arith.constant 0 : index
    %c0_25 = arith.constant 0 : index
    %c0_26 = arith.constant 0 : index
    %c0_27 = arith.constant 0 : index
    %147 = vector.load %arg5[%c0_24, %c0_25, %c0_26, %c0_27] : memref<1x1x144x128xf32, #tpu.memory_space<vmem>>, vector<1x1x128x128xf32>
    %148 = vector.shape_cast %147 : vector<1x1x128x128xf32> to vector<128x128xf32>
    %149 = arith.minimumf %148, %146 : vector<128x128xf32>
    %c0_28 = arith.constant 0 : index
    %c0_29 = arith.constant 0 : index
    %c0_30 = arith.constant 0 : index
    %c0_31 = arith.constant 0 : index
    %150 = vector.load %arg5[%c0_28, %c0_29, %c0_30, %c0_31] : memref<1x1x144x128xf32, #tpu.memory_space<vmem>>, vector<1x1x128x128xf32>
    %151 = vector.shape_cast %150 : vector<1x1x128x128xf32> to vector<128x128xf32>
    %152 = vector.shape_cast %149 : vector<128x128xf32> to vector<1x1x128x128xf32>
    tpu.vector_store %arg5[%c0_28, %c0_29, %c0_30, %c0_31], %152 {strides = array<i32>} : memref<1x1x144x128xf32, #tpu.memory_space<vmem>>, vector<1x1x128x128xf32>,
    %c0_32 = arith.constant 0 : index
    %c0_33 = arith.constant 0 : index
    %c128 = arith.constant 128 : index
    %c0_34 = arith.constant 0 : index
    %153 = vector.load %arg5[%c0_32, %c0_33, %c128, %c0_34] : memref<1x1x144x128xf32, #tpu.memory_space<vmem>>, vector<1x1x16x128xf32>
    %154 = vector.shape_cast %153 : vector<1x1x16x128xf32> to vector<16x128xf32>
    %155 = tpu.concatenate %142, %145 in 0 : vector<8x128xf32>, vector<8x128xf32> -> vector<16x128xf32>
    %156 = arith.addf %154, %155 : vector<16x128xf32>
    %c0_35 = arith.constant 0 : index
    %c0_36 = arith.constant 0 : index
    %c128_37 = arith.constant 128 : index
    %c0_38 = arith.constant 0 : index
    %157 = vector.load %arg5[%c0_35, %c0_36, %c128_37, %c0_38] : memref<1x1x144x128xf32, #tpu.memory_space<vmem>>, vector<1x1x16x128xf32>
    %158 = vector.shape_cast %157 : vector<1x1x16x128xf32> to vector<16x128xf32>
    %159 = vector.shape_cast %156 : vector<16x128xf32> to vector<1x1x16x128xf32>
    tpu.vector_store %arg5[%c0_35, %c0_36, %c128_37, %c0_38], %159 {strides = array<i32>} : memref<1x1x144x128xf32, #tpu.memory_space<vmem>>, vector<1x1x16x128xf32>,
    return
  }
  func.func @transform_0(%arg0: i32, %arg1: i32, %arg2: i32) -> (i32, i32) {
    %c0_i32 = arith.constant 0 : i32
    %c0_i32_0 = arith.constant 0 : i32
    %c0_i32_1 = arith.constant 0 : i32
    return %c0_i32, %c0_i32_0 : i32, i32
  }
  func.func @transform_1(%arg0: i32, %arg1: i32, %arg2: i32) -> (i32, i32, i32, i32) {
    %c1_i32 = arith.constant 1 : i32
    %0 = arith.muli %arg1, %c1_i32 : i32
    %1 = arith.addi %0, %arg2 : i32
    %c0_i32 = arith.constant 0 : i32
    %c0_i32_0 = arith.constant 0 : i32
    %c0_i32_1 = arith.constant 0 : i32
    return %arg0, %1, %c0_i32, %c0_i32_0 : i32, i32, i32, i32
  }
  func.func @transform_2(%arg0: i32, %arg1: i32, %arg2: i32) -> (i32, i32, i32, i32) {
    %c0_i32 = arith.constant 0 : i32
    %c0_i32_0 = arith.constant 0 : i32
    %c0_i32_1 = arith.constant 0 : i32
    return %arg0, %arg1, %c0_i32, %c0_i32_0 : i32, i32, i32, i32
  }
}

</mosaic_0001>

<bundles_post_ra>
// kernel: tpu_custom_call.1
= control target key start
LH: loop header
LB: loop body
LE: loop exit
PB: predicated region body
PF: predicated region fallthrough
CT: control target
= control target key end

     0   :  { %7 = vsyncpa [#allocation5], 0  ;;  %s1090_s0 = inlined_call_operand.hbm [shape: f32[2,16], index: 0, kind: input, shape index: {}]   ;;  %s1091_s1 = inlined_call_operand.hbm [shape: f32[2,1,8,128], index: 1, kind: input, shape index: {}]   ;;  %s1092_s2 = inlined_call_operand.hbm [shape: f32[2,1,144,128], index: 2, kind: output, shape index: {}]  }
   0x1   :  { %8 = vsyncpa [#allocation3], 0 }
   0x2   :  { %10 = vsyncpa [#allocation3 + $0x1], 0 }
   0x3   :  { %11 = vsyncpa [#allocation4], 0 }
   0x4   :  { %13 = vsyncpa [#allocation4 + $0x1], 0  ;;  %s757_s9 = smov 0   ;;  %s759_s10 = smov 0  }
   0x5   :  { %s761_s11 = smov 0   ;;  %s763_s12 = smov 0  }
   0x6   :  { %s765_s13 = smov 0   ;;  %s767_s14 = smov 0  }
   0x7 LB: > { %s511_s15 = sadd.s32 4294967295, %s734_s14   ;;  %s512_s16 = sadd.s32 4294967294, %s734_s14   ;;  %s734_s14 = sphi %s767_s14, %s19_s14   ;;  %s730_s13 = sphi %s765_s13, %s1116_s13   ;;  %s726_s12 = sphi %s763_s12, %s1115_s12   ;;  %s722_s11 = sphi %s761_s11, %s1114_s11   ;;  %s718_s10 = sphi %s759_s10, %s1113_s10   ;;  %s714_s9 = sphi %s757_s9, %s1112_s9  }
   0x8   : > { %p83_p0 = scmp.ne.s32.totalorder %s718_s10, %s714_s9  ;;  %p791_p1 = scmp.eq.s32.totalorder %s511_s15, 0 }
   0x9   : > { %p795_p2 = scmp.eq.s32.totalorder %s511_s15, 1  ;;  %p115_p3 = scmp.eq.s32.totalorder %s512_s16, 1 }
   0xa   : > { %s1097_s17 = scalar_select %p791_p1, 1, 0 }
   0xb   : > { %p801_p4 = por %p791_p1, %p83_p0  ;;  %p513_p5 = scmp.ge.s32.totalorder %s734_s14, 1 }
   0xc   : > { %p806_p6 = por %p115_p3, %p83_p0  ;;  %p122_p7 = scmp.lt.s32.totalorder %s734_s14, 3 }
   0xd   : > { %s1099_s19 = scalar_select %p801_p4, 1, 0 }
   0xe   : > { %s1100_s20 = scalar_select %p806_p6, 1, 0 }
   0xf   : > { %p811_p8 = pnand %p513_p5, %p122_p7  ;;  %s38_s22 = sadd.s32 1, %s730_s13 }
  0x10   : > { %p825_p12 = scmp.ge.s32.totalorder %s38_s22, 2  ;;  %s70_s25 = sadd.s32 1, %s722_s11 }
  0x11   : > { %p536_p10 = pneg %p811_p8  ;;  %p77_p13 = scmp.ne.s32.totalorder %s722_s11, %s718_s10 }
  0x12   : > { %p78_p0 = scmp.eq.s32.totalorder %s734_s14, 0  ;;  %s605_s28 = scalar_lea.hbm %s1090_s0, 32 }
  0x13   : > { %p821_p11 = pnand %p536_p10, %p791_p1  ;;  %p606_p3 = scmp.ne.s32.totalorder %s1090_s0, %s605_s28 }
  0x14   : > { %p612_p9 = scmp.lt.u32.totalorder %s605_s28, %s1090_s0 }
  0x15   : > { %p607_p5 = pneg %p821_p11 }
  0x17   : > { %p608_p7 = pnand %p607_p5, %p606_p3 }
  0x19   : > { %p609_p10 = pneg %p608_p7 }
  0x1b   : > { %p614_p6 = pnand %p612_p9, %p609_p10 }
  0x1d   : > { %617 = shalt.err (!%p614_p6)
}
  0x1e   : > { %s736_s5 = smov [#allocation2]   ;;  %s1118_s22 = smov (%p825_p12, %s38_s22), 0 }
  0x1f   : > { %539 = dma.hbm_to_smem (!%p821_p11), %s1090_s0, 32, %s736_s5, [#allocation5]  }
  0x20   : > { %p856_p6 = por %p78_p0, %p77_p13  ;;  %p865_p9 = por %p795_p2, %p77_p13 }
  0x21   : > { %s65_s16 = ssub.s32 %s730_s13, %s1118_s22  ;;  %p549_p3 = scmp.lt.s32.totalorder %s734_s14, 2 }
  0x22   : > { %s1105_s15 = scalar_select %p865_p9, 1, 0 }
  0x23   : > { %p68_p5 = scmp.eq.s32.totalorder %s65_s16, 0  ;;  %s144_s23 = sand.u32 1, %s722_s11  }
  0x24   : > { %s516_s24 = sshll.u32 %s144_s23, 3  ;;  %s517_s27 = sshll.u32 %s730_s13, 7 }
  0x25   : > { %s874_s26 = scalar_select %p68_p5, %s722_s11, %s70_s25  }
  0x26   : > { %s880_s30 = scalar_lea.hbm %s1091_s1, %s517_s27  ;;  %s148_s18 = scalar_lea.vmem [#allocation6], %s516_s24 }
  0x27   : > { %s157_s3 = sshll.u32 %s148_s18, 4  ;;  %p886_p2 = pnand %p549_p3, %p856_p6  ;;  %s882_s3 = int_to_ptr.vmem [resolvable:$true] %s157_s3 }
  0x28   : > { %s145_s25 = scalar_lea.sflag [#allocation3], %s144_s23  ;;  %s618_s5 = scalar_lea.hbm %s880_s30, 128 }
  0x29   : > { %p619_p11 = scmp.ne.s32.totalorder %s880_s30, %s618_s5  ;;  %p620_p12 = pneg %p886_p2 }
  0x2a   : > { %s623_s16 = scalar_lea.hbm %s1091_s1, 256  ;;  %p624_p7 = scmp.lt.u32.totalorder %s880_s30, %s1091_s1 }
  0x2b   : > { %p621_p13 = pnand %p620_p12, %p619_p11  ;;  %p625_p10 = scmp.lt.u32.totalorder %s623_s16, %s618_s5 }
  0x2c   : > { %p627_p3 = scmp.lt.u32.totalorder %s618_s5, %s880_s30 }
  0x2d   : > { %p622_p0 = pneg %p621_p13  ;;  %p626_p6 = por %p625_p10, %p624_p7 }
  0x2f   : > { %p628_p5 = por %p627_p3, %p626_p6 }
  0x31   : > { %p629_p9 = pnand %p628_p5, %p622_p0 }
  0x33   : > { %632 = shalt.err (!%p629_p9)
}
  0x34   : > { %s633_s23 = scalar_lea.vmem %s882_s3, 128  ;;  %s737_s27 = smov [#allocation6]  }
  0x35   : > { %p634_p11 = scmp.ne.s32.totalorder %s882_s3, %s633_s23  ;;  %s638_s28 = sshll.u32 %s737_s27, 4  ;;  %s639_s28 = int_to_ptr.vmem [resolvable:$false] %s638_s28 }
  0x36   : > { %s640_s29 = scalar_lea.vmem %s639_s28, 256  ;;  %p641_p1 = scmp.lt.s32.totalorder %s882_s3, %s639_s28 }
  0x37   : > { %p636_p13 = pnand %p634_p11, %p620_p12  ;;  %p642_p7 = scmp.lt.s32.totalorder %s640_s29, %s633_s23 }
  0x39   : > { %p637_p4 = pneg %p636_p13  ;;  %p643_p10 = por %p642_p7, %p641_p1 }
  0x3b   : > { %p644_p6 = pnand %p643_p10, %p637_p4 }
  0x3d   : > { %647 = shalt.err (!%p644_p6)
}
  0x3e   : > { %543 = dma.hbm_to_vmem [thread:$0]  (!%p886_p2), %s880_s30, 128, %s882_s3, %s145_s25  }
  0x3f   : > { %166 = sbr.rel (%p811_p8) target bundleno = 136 (0x88), region = 28  ;;  %p1107_p9 = scmp.ne.s32.totalorder (!%p811_p8), %s1097_s17, 0 }
  0x46   : > { %701 = dma.done.wait (%p1107_p9), [#allocation5], 32  }
  0x47   : > { %703 = vsyncadd (%p1107_p9), [#allocation5], 4294967264  ;;  %s922_s18 = sand.u32 1, %s718_s10   ;;  %p1108_p1 = scmp.ne.s32.totalorder %s1099_s19, 0 }
  0x48   : > { %s520_s5 = sshll.u32 %s922_s18, 3  ;;  %s173_s4 = scalar_lea.sflag [#allocation3], %s922_s18 }
  0x49   : > { %s176_s6 = scalar_lea.vmem [#allocation6], %s520_s5 }
  0x4a   : > { %705 = dma.done.wait (%p1108_p1), %s173_s4, 128  }
  0x4b   : > { %707 = vsyncadd (%p1108_p1), %s173_s4, 4294967168 }
  0x4c   : > { %181 = sfence }
  0x4d   : > { %s526_s21 = smul.u32 144, %s922_s18  ;;  %v931_v0 = vld [vmem:[%s176_s6] sm:$0xff]  ;;  %s934_s17 = sshll.u32 %s726_s12, 7  ;;  %v738_v1 = vmov 0.0  }
  0x4e   : > { %vm270_vm0 = vcmp.ge.f32.partialorder %v931_v0, 0.001  ;;  %s222_s30 = sld [smem:[#allocation2 + %s934_s17]]  ;;  %s224_s3 = sadd.s32 1, %s934_s17 }
  0x4f   : > { %v522_v2 = vsel %vm270_vm0, 1.0, %v738_v1  ;;  %s225_s19 = sld [smem:[#allocation2 + %s224_s3]]  ;;  %s227_s25 = sadd.s32 2, %s934_s17  ;;  %v946_v3 = vsel %vm270_vm0, %v931_v0, 1e+18 }
  0x50   : > { %s230_s7 = sadd.s32 3, %s934_s17  ;;  %s228_s16 = sld [smem:[#allocation2 + %s227_s25]] }
  0x51   : > { %s231_s8 = sld [smem:[#allocation2 + %s230_s7]]  ;;  %s233_s24 = sadd.s32 4, %s934_s17 }
  0x52   : > { %s236_s23 = sadd.s32 5, %s934_s17  ;;  %s950_s27 = scalar_lea.vmem [#allocation7], %s526_s21 }
  0x53   : > { %393 = vst [vmem:[%s950_s27 + $0x88] sm:$0xff] %v522_v2  ;;  %s953_s28 = sld [smem:[#allocation2 + %s233_s24]]  ;;  %s239_s5 = sadd.s32 6, %s934_s17 }
  0x54   : > { %s955_s29 = sld [smem:[#allocation2 + %s236_s23]]  ;;  %v223_v4 = vstv %s222_s30  ;;  %s242_s4 = sadd.s32 7, %s934_s17 }
  0x55   : > { %v272_v5 = vsub.f32 %v946_v3, %v223_v4  ;;  %v226_v6 = vstv %s225_s19  ;;  %s960_s6 = sld [smem:[#allocation2 + %s239_s5]]  ;;  %s245_s21 = sadd.s32 8, %s934_s17 }
  0x56   : > { %s962_s3 = sld [smem:[#allocation2 + %s242_s4]]  ;;  %v275_v7 = vsub.f32 %v946_v3, %v226_v6  ;;  %s248_s25 = sadd.s32 9, %s934_s17  ;;  %v229_v9 = vstv %s228_s16 }
  0x57   : > { %v273_v8 = vmul.f32 %v272_v5, %v272_v5  ;;  %v232_v10 = vstv %s231_s8  ;;  %s967_s30 = sld [smem:[#allocation2 + %s245_s21]]  ;;  %v279_v12 = vsub.f32 %v946_v3, %v229_v9  ;;  %s251_s19 = sadd.s32 10, %s934_s17 }
  0x58   : > { %s969_s7 = sld [smem:[#allocation2 + %s248_s25]]  ;;  %v276_v11 = vmul.f32 %v275_v7, %v275_v7  ;;  %v283_v13 = vsub.f32 %v946_v3, %v232_v10  ;;  %s254_s24 = sadd.s32 11, %s934_s17 }
  0x59   : > { %v274_v14 = vmin.f32 %v273_v8, 1e+37  ;;  %v235_v15 = vstv %s953_s28  ;;  %s977_s23 = sld [smem:[#allocation2 + %s251_s19]]  ;;  %v280_v19 = vmul.f32 %v279_v12, %v279_v12  ;;  %s257_s16 = sadd.s32 12, %s934_s17 }
  0x5a   : > { %v238_v16 = vstv %s955_s29  ;;  %v277_v17 = vmin.f32 %v276_v11, 1e+37  ;;  %v278_v18 = vmin.f32 %v273_v8, %v276_v11  ;;  %v284_v20 = vmul.f32 %v283_v13, %v283_v13  ;;  %s260_s8 = sadd.s32 13, %s934_s17  ;;  %s984_s28 = sld [smem:[#allocation2 + %s254_s24]] }
  0x5b   : > { %v356_v21 = vmin.f32 %v274_v14, 1e+37  ;;  %v287_v22 = vsub.f32 %v946_v3, %v235_v15  ;;  %v291_v23 = vsub.f32 %v946_v3, %v238_v16  ;;  %v241_v24 = vstv %s960_s6  ;;  %s263_s29 = sadd.s32 14, %s934_s17  ;;  %s990_s5 = sld [smem:[#allocation2 + %s257_s16]] }
  0x5c   : > { %v357_v25 = vmin.f32 %v277_v17, 1e+37  ;;  %v281_v26 = vmin.f32 %v280_v19, 1e+37  ;;  %v282_v27 = vmin.f32 %v278_v18, %v280_v19  ;;  %v285_v28 = vmin.f32 %v284_v20, 1e+37 }
  0x5d   : > { %372 = vst [vmem:[%s950_s27] sm:$0xff] %v356_v21  ;;  %v288_v29 = vmul.f32 %v287_v22, %v287_v22  ;;  %v292_v30 = vmul.f32 %v291_v23, %v291_v23  ;;  %v295_v31 = vsub.f32 %v946_v3, %v241_v24  ;;  %v244_v32 = vstv %s962_s3  ;;  %s992_s4 = sld [smem:[#allocation2 + %s260_s8]]  ;;  %s266_s6 = sadd.s32 15, %s934_s17 }
  0x5e   : > { %373 = vst [vmem:[%s950_s27 + $0x8] sm:$0xff] %v357_v25  ;;  %v358_v33 = vmin.f32 %v281_v26, 1e+37  ;;  %v286_v34 = vmin.f32 %v282_v27, %v284_v20  ;;  %v359_v35 = vmin.f32 %v285_v28, 1e+37  ;;  %v299_v36 = vsub.f32 %v946_v3, %v244_v32  ;;  %s998_s21 = sld [smem:[#allocation2 + %s263_s29]] }
  0x5f   : > { %v289_v37 = vmin.f32 %v288_v29, 1e+37  ;;  %v293_v38 = vmin.f32 %v292_v30, 1e+37  ;;  %v296_v39 = vmul.f32 %v295_v31, %v295_v31  ;;  %v247_v40 = vstv %s967_s30  ;;  %s1005_s17 = sld [smem:[#allocation2 + %s266_s6]]  ;;  %s527_s3 = smul.u32 2304, %s726_s12 }
  0x60   : > { %374 = vst [vmem:[%s950_s27 + $0x10] sm:$0xff] %v358_v33  ;;  %375 = vst [vmem:[%s950_s27 + $0x18] sm:$0xff] %v359_v35  ;;  %v290_v41 = vmin.f32 %v286_v34, %v288_v29  ;;  %v300_v42 = vmul.f32 %v299_v36, %v299_v36  ;;  %v303_v43 = vsub.f32 %v946_v3, %v247_v40  ;;  %v250_v44 = vstv %s969_s7  ;;  %s410_s25 = sshll.u32 %s950_s27, 4  ;;  %s395_s24 = scalar_lea.sflag [#allocation4], %s922_s18  ;;  %s1040_s25 = int_to_ptr.vmem [resolvable:$true] %s410_s25 }
  0x61   : > { %v360_v45 = vmin.f32 %v289_v37, 1e+37  ;;  %v361_v46 = vmin.f32 %v293_v38, 1e+37  ;;  %v297_v47 = vmin.f32 %v296_v39, 1e+37  ;;  %v307_v48 = vsub.f32 %v946_v3, %v250_v44  ;;  %s1038_s19 = scalar_lea.hbm %s1092_s2, %s527_s3 }
  0x62   : > { %v294_v49 = vmin.f32 %v290_v41, %v292_v30  ;;  %v301_v50 = vmin.f32 %v300_v42, 1e+37  ;;  %v304_v51 = vmul.f32 %v303_v43, %v303_v43  ;;  %v253_v52 = vstv %s977_s23  ;;  %s648_s23 = scalar_lea.vmem %s1040_s25, 2304  ;;  %p1109_p8 = scmp.ne.s32.totalorder %s1105_s15, 0 }
  0x63   : > { %376 = vst [vmem:[%s950_s27 + $0x20] sm:$0xff] %v360_v45  ;;  %377 = vst [vmem:[%s950_s27 + $0x28] sm:$0xff] %v361_v46  ;;  %v362_v53 = vmin.f32 %v297_v47, 1e+37  ;;  %v308_v54 = vmul.f32 %v307_v48, %v307_v48  ;;  %v311_v55 = vsub.f32 %v946_v3, %v253_v52  ;;  %v256_v56 = vstv %s984_s28  ;;  %p649_p4 = scmp.ne.s32.totalorder %s1040_s25, %s648_s23  ;;  %s739_s12 = smov [#allocation7]  }
  0x64   : > { %v298_v57 = vmin.f32 %v294_v49, %v296_v39  ;;  %v363_v58 = vmin.f32 %v301_v50, 1e+37  ;;  %v305_v59 = vmin.f32 %v304_v51, 1e+37  ;;  %v315_v60 = vsub.f32 %v946_v3, %v256_v56  ;;  %s652_s16 = sshll.u32 %s739_s12, 4  ;;  %s653_s16 = int_to_ptr.vmem [resolvable:$false] %s652_s16 }
  0x65   : > { %378 = vst [vmem:[%s950_s27 + $0x30] sm:$0xff] %v362_v53  ;;  %v309_v61 = vmin.f32 %v308_v54, 1e+37  ;;  %v312_v62 = vmul.f32 %v311_v55, %v311_v55  ;;  %v259_v63 = vstv %s990_s5  ;;  %v262_v1 = vstv %s992_s4  ;;  %p650_p2 = pnand %p649_p4, %p1109_p8  ;;  %s654_s8 = scalar_lea.vmem %s653_s16, 4608 }
  0x66   : > { %v302_v2 = vmin.f32 %v298_v57, %v300_v42  ;;  %379 = vst [vmem:[%s950_s27 + $0x38] sm:$0xff] %v363_v58  ;;  %v364_v4 = vmin.f32 %v305_v59, 1e+37  ;;  %v316_v5 = vmul.f32 %v315_v60, %v315_v60  ;;  %v319_v6 = vsub.f32 %v946_v3, %v259_v63  ;;  %p655_p0 = scmp.lt.s32.totalorder %s1040_s25, %s653_s16  ;;  %p656_p3 = scmp.lt.s32.totalorder %s654_s8, %s648_s23 }
  0x67   : > { %v365_v7 = vmin.f32 %v309_v61, 1e+37  ;;  %v313_v8 = vmin.f32 %v312_v62, 1e+37  ;;  %v323_v9 = vsub.f32 %v946_v3, %v262_v1  ;;  %v265_v10 = vstv %s998_s21  ;;  %p651_p12 = pneg %p650_p2 }
  0x68   : > { %v306_v11 = vmin.f32 %v302_v2, %v304_v51  ;;  %380 = vst [vmem:[%s950_s27 + $0x40] sm:$0xff] %v364_v4  ;;  %v317_v12 = vmin.f32 %v316_v5, 1e+37  ;;  %v320_v13 = vmul.f32 %v319_v6, %v319_v6  ;;  %v327_v14 = vsub.f32 %v946_v3, %v265_v10  ;;  %p657_p5 = por %p656_p3, %p655_p0 }
  0x69   : > { %381 = vst [vmem:[%s950_s27 + $0x48] sm:$0xff] %v365_v7  ;;  %v366_v15 = vmin.f32 %v313_v8, 1e+37  ;;  %v324_v16 = vmul.f32 %v323_v9, %v323_v9  ;;  %v268_v17 = vstv %s1005_s17 }
  0x6a   : > { %v310_v18 = vmin.f32 %v306_v11, %v308_v54  ;;  %v367_v19 = vmin.f32 %v317_v12, 1e+37  ;;  %v321_v20 = vmin.f32 %v320_v13, 1e+37  ;;  %v328_v21 = vmul.f32 %v327_v14, %v327_v14  ;;  %p658_p11 = pnand %p657_p5, %p651_p12 }
  0x6b   : > { %382 = vst [vmem:[%s950_s27 + $0x50] sm:$0xff] %v366_v15  ;;  %v325_v22 = vmin.f32 %v324_v16, 1e+37  ;;  %v331_v23 = vsub.f32 %v946_v3, %v268_v17 }
  0x6c   : > { %v314_v24 = vmin.f32 %v310_v18, %v312_v62  ;;  %383 = vst [vmem:[%s950_s27 + $0x58] sm:$0xff] %v367_v19  ;;  %v368_v25 = vmin.f32 %v321_v20, 1e+37  ;;  %v329_v26 = vmin.f32 %v328_v21, 1e+37 }
  0x6d   : > { %v369_v27 = vmin.f32 %v325_v22, 1e+37  ;;  %v332_v28 = vmul.f32 %v331_v23, %v331_v23 }
  0x6e   : > { %v318_v29 = vmin.f32 %v314_v24, %v316_v5  ;;  %384 = vst [vmem:[%s950_s27 + $0x60] sm:$0xff] %v368_v25  ;;  %v370_v30 = vmin.f32 %v329_v26, 1e+37 }
  0x6f   : > { %385 = vst [vmem:[%s950_s27 + $0x68] sm:$0xff] %v369_v27  ;;  %v333_v31 = vmin.f32 %v332_v28, 1e+37 }
  0x70   : > { %v322_v32 = vmin.f32 %v318_v29, %v320_v13  ;;  %386 = vst [vmem:[%s950_s27 + $0x70] sm:$0xff] %v370_v30 }
  0x71   : > { %v371_v3 = vmin.f32 %v333_v31, 1e+37 }
  0x72   : > { %v326_v33 = vmin.f32 %v322_v32, %v324_v16 }
  0x73   : > { %387 = vst [vmem:[%s950_s27 + $0x78] sm:$0xff] %v371_v3 }
  0x74   : > { %v330_v34 = vmin.f32 %v326_v33, %v328_v21 }
  0x76   : > { %v334_v35 = vmin.f32 %v330_v34, %v332_v28 }
  0x78   : > { %v335_v36 = vsel %vm270_vm0, %v334_v35, 0.0 }
  0x79   : > { %392 = vst [vmem:[%s950_s27 + $0x80] sm:$0xff] %v335_v36 }
  0x7a   : > { %661 = shalt.err (!%p658_p11)
}
  0x7b   : > { %s662_s27 = scalar_lea.hbm %s1038_s19, 2304  ;;  %s666_s5 = scalar_lea.hbm %s1092_s2, 4608 }
  0x7c   : > { %p663_p13 = scmp.ne.s32.totalorder %s1038_s19, %s662_s27  ;;  %p667_p6 = scmp.lt.u32.totalorder %s1038_s19, %s1092_s2 }
  0x7d   : > { %p668_p9 = scmp.lt.u32.totalorder %s666_s5, %s662_s27  ;;  %p670_p4 = scmp.lt.u32.totalorder %s662_s27, %s1038_s19 }
  0x7e   : > { %p664_p7 = pnand %p663_p13, %p1109_p8 }
  0x7f   : > { %p669_p1 = por %p668_p9, %p667_p6 }
  0x80   : > { %p665_p10 = pneg %p664_p7 }
  0x81   : > { %p671_p2 = por %p670_p4, %p669_p1 }
  0x83   : > { %p672_p12 = pnand %p671_p2, %p665_p10 }
  0x85   : > { %675 = shalt.err (!%p672_p12)
}
  0x86   : > { %s740_s21 = smov 128   ;;  %s741_s17 = smov 8  }
  0x87   : > { %534 = dma.vmem_to_hbm [thread:$0]  (%p1109_p8), %s1040_s25, 2304, %s1038_s19, %s395_s24, %s740_s21, %s740_s21, %s741_s17  }
  0x88 PF: > { %s425_s3 = sand.u32 1, %s714_s9   ;;  %p1110_p0 = scmp.ne.s32.totalorder %s1100_s20, 0 }
  0x89   : > { %p1111_p3 = scmp.ge.s32.totalorder %s734_s14, 2  ;;  %s426_s30 = scalar_lea.sflag [#allocation4], %s425_s3 }
  0x8b   : > { %p545_p5 = pnand %p1111_p3, %p1110_p0 }
  0x8d   : > { %709 = dma.done.wait (!%p545_p5), %s426_s30, 2304  }
  0x8e   : > { %711 = vsyncadd (!%p545_p5), %s426_s30, 4294964992  ;;  %s19_s14 = sadd.s32 1, %s734_s14   ;;  %s1112_s9 = smov %s718_s10 }
  0x8f   : > { %p16_p11 = scmp.ge.s32.totalorder %s19_s14, 4   ;;  %s1113_s10 = smov %s722_s11 }
  0x90   : > { %s1114_s11 = smov %s874_s26  ;;  %s1115_s12 = smov %s730_s13 }
  0x91   : > { %s1116_s13 = smov %s1118_s22  ;;  %18 = sbr.rel (!%p16_p11) target bundleno = 7 (0x7), region = 82 }
  0x98   :  { %431 = vsyncpa [#allocation3], 1 }
  0x99   :  { %433 = vsyncpa [#allocation3 + $0x1], 1 }
  0x9a   :  { %434 = vsyncpa [#allocation4], 1 }
  0x9b   :  { %436 = vsyncpa [#allocation4 + $0x1], 1 }
  0x9c   :  { %437 = vsyncpa [#allocation5], 1 }
  0x9d   :  { %439 = vsyncpa [#allocation5 + $0x1], 1 }

</bundles_post_ra>
